<compile_context>
chip_gen: v6e
topology: v6e:2x2x1
jax: 0.10.0
libtpu: 0.0.40
codegen_flags: <defaults>
</compile_context>

<pallas_src>
import functools

import jax
import jax.numpy as jnp
from jax.experimental import pallas as pl
from jax.experimental.pallas import tpu as pltpu


def attention_kernel(x_ref, gamma_ref, beta_ref, wq_ref, wk_ref, wv_ref, wout_ref,
                     bout_ref, o_ref, *, batch_tile, seq_len, heads, dim_head, eps):
    mt = batch_tile * seq_len          # rows in this slab (batch fused into the matmul M dim)
    g = heads * batch_tile             # fused (head, batch) einsum batch dimension

    # ---- LayerNorm (f32 stats, eps inside sqrt, biased variance -- like nn.LayerNorm) ----
    # Input here is f32; for bf16 inputs only the stats / xn temporaries are held in f32 and
    # the normalized activations are narrowed back to bf16 immediately for the MXU.
    x = x_ref[...].astype(jnp.float32)                                  # (Mt, D)
    mean = jnp.mean(x, axis=-1, keepdims=True)
    var = jnp.mean(jnp.square(x - mean), axis=-1, keepdims=True)
    xn = (x - mean) * jax.lax.rsqrt(var + eps) * gamma_ref[...].astype(jnp.float32) \
         + beta_ref[...].astype(jnp.float32)
    xn = xn.astype(jnp.bfloat16)                                        # bf16 MXU operand

    # ---- QKV projections, head-major.  Per-head weights are free leading-dim ref views;
    # the stack/reshape below only touches leading / sublane-aligned dims (N multiple of 8),
    # so q/k/v land in a (heads*Bt, N, dim_head) batch with no 16-lane slicing. ----
    def project(w_ref):
        per_head = [jnp.dot(xn, w_ref[h], preferred_element_type=jnp.float32)
                    for h in range(heads)]                              # heads x (Mt, d)
        t = jnp.stack(per_head, axis=0).astype(jnp.bfloat16)            # (heads, Mt, d)
        return t.reshape(g, seq_len, dim_head)                          # (G, N, d)

    q = project(wq_ref)        # softmax scale is pre-folded into wq by the wrapper
    k = project(wk_ref)
    v = project(wv_ref)

    # ---- scores + softmax, batched over (head, batch) in a single 3-D einsum ----
    s = jnp.einsum('gnd,gmd->gnm', q, k, preferred_element_type=jnp.float32)   # (G, N, N) f32
    s = s - jnp.max(s, axis=-1, keepdims=True)
    e = jnp.exp(s)
    denom = jnp.sum(e, axis=-1, keepdims=True)                                  # (G, N, 1)

    # attn @ v (bf16 operands, f32 accumulation); exact normalization afterwards.
    o = jnp.einsum('gnm,gmd->gnd', e.astype(jnp.bfloat16), v,
                   preferred_element_type=jnp.float32)                          # (G, N, d)
    o = o / denom                                                                # exact divide
    # dropout(p=0.0) == identity

    # ---- out-projection: regroup heads back onto the lane dim (Mt, inner) and do ONE
    # (Mt, inner) @ (inner, D) matmul with K = inner, then add the bias. ----
    o = o.astype(jnp.bfloat16).reshape(heads, mt, dim_head)                     # leading regroup
    out_cat = jnp.concatenate([o[h] for h in range(heads)], axis=-1)            # (Mt, inner)
    y = jnp.dot(out_cat, wout_ref[...], preferred_element_type=jnp.float32)     # (Mt, D)
    y = y + bout_ref[...].astype(jnp.float32)
    o_ref[...] = y.astype(o_ref.dtype)


def _tpu_kind():
    try:
        return jax.devices()[0].device_kind.lower()
    except Exception:
        return ""


def _pick_tiling(B, N, D, heads, dim_head):
    """Per-generation batch-tile / VMEM sizing (see header notes)."""
    kind = _tpu_kind()
    inner = heads * dim_head
    if "v7" in kind or "7x" in kind:
        budget = 24 << 20          # size against ~half of v7x's 64 MiB VMEM (headroom left)
        vmem_limit = 48 << 20
        want_two_steps = True      # >= 2 parallel grid steps -> both TensorCores busy
    elif "v5" in kind or "v6" in kind:
        budget = 64 << 20          # 128 MiB VMEM, single TensorCore: maximize the tile
        vmem_limit = 96 << 20
        want_two_steps = False
    else:                          # unknown backend: stay conservative
        budget = 12 << 20
        vmem_limit = 32 << 20
        want_two_steps = False

    def working_set(bt):
        m, gg = bt * N, bt * heads
        x_io = 2 * (m * D * 4) * 2                 # in + out row slabs, double-buffered, f32
        qkv = 3 * m * inner * (4 + 2)              # f32 matmul accum + bf16 copies of q/k/v
        scores = 2 * gg * N * N * 4                # scores + exp(scores), f32
        weights = (3 * heads * D * dim_head + inner * D) * 2 + 4 * D * 4
        return x_io + qkv + scores + weights

    # Divisors of B that keep the (Mt, D) BlockSpec legal (Bt*N % 8 == 0, or the full array).
    cands = [bt for bt in range(1, B + 1)
             if B % bt == 0 and ((bt * N) % 8 == 0 or bt == B)]
    fits = [bt for bt in cands if working_set(bt) <= budget] or [min(cands)]
    if want_two_steps and B >= 2:
        fits = [bt for bt in fits if B // bt >= 2] or fits
    # Largest qualifying tile: fewest grid steps (~0.35us each) and tall M per matmul.
    return max(fits), vmem_limit


def attention_forward(x, gamma, beta, wqkv, wout, bout, *, heads, dim_head):
    B, N, D = x.shape
    inner = heads * dim_head
    assert wqkv.shape == (D, 3 * inner)
    assert wout.shape == (inner, D)

    scale = float(dim_head) ** (-0.5)

    # Wrapper-side weight prep (one-time): split qkv, fold the softmax scale into the q
    # projection, reshape to per-head (heads, D, dim_head) blocks, and cast to bf16 so the
    # kernel feeds the MXU bf16 operands (f32 accumulation inside).
    wq, wk, wv = jnp.split(wqkv, 3, axis=-1)                  # (D, inner) each
    wq = wq * scale

    def per_head(w):
        return jnp.transpose(w.reshape(D, heads, dim_head), (1, 0, 2)).astype(jnp.bfloat16)

    wq_h, wk_h, wv_h = per_head(wq), per_head(wk), per_head(wv)
    wout_b = wout.astype(jnp.bfloat16)                        # rows already head-major (h, d)

    x2 = x.reshape(B * N, D)                                  # fuse batch into the matmul M dim

    Bt, vmem_limit = _pick_tiling(B, N, D, heads, dim_head)
    assert B % Bt == 0
    Mt = Bt * N
    assert Mt % 8 == 0 or Mt == B * N

    kernel = functools.partial(
        attention_kernel,
        batch_tile=Bt, seq_len=N, heads=heads, dim_head=dim_head, eps=1e-5)

    y2 = pl.pallas_call(
        kernel,
        out_shape=jax.ShapeDtypeStruct((B * N, D), x.dtype),
        grid=(B // Bt,),
        in_specs=[
            pl.BlockSpec((Mt, D), lambda i: (i, 0)),                    # x row slab
            pl.BlockSpec((1, D), lambda i: (0, 0)),                     # LN gamma (resident)
            pl.BlockSpec((1, D), lambda i: (0, 0)),                     # LN beta
            pl.BlockSpec((heads, D, dim_head), lambda i: (0, 0, 0)),    # Wq (scaled, bf16)
            pl.BlockSpec((heads, D, dim_head), lambda i: (0, 0, 0)),    # Wk (bf16)
            pl.BlockSpec((heads, D, dim_head), lambda i: (0, 0, 0)),    # Wv (bf16)
            pl.BlockSpec((inner, D), lambda i: (0, 0)),                 # out-proj weight (bf16)
            pl.BlockSpec((1, D), lambda i: (0, 0)),                     # out-proj bias
        ],
        out_specs=pl.BlockSpec((Mt, D), lambda i: (i, 0)),
        compiler_params=pltpu.CompilerParams(
            dimension_semantics=("parallel",),
            vmem_limit_bytes=vmem_limit,
        ),
    )(x2, gamma, beta, wq_h, wk_h, wv_h, wout_b, bout)

    return y2.reshape(B, N, D)


def reference_forward(x, gamma, beta, wqkv, wout, bout, *, heads, dim_head):
    """Pure-JAX f32 reference mirroring the PyTorch module (for verification)."""
    x = x.astype(jnp.float32)
    mean = jnp.mean(x, axis=-1, keepdims=True)
    var = jnp.mean((x - mean) ** 2, axis=-1, keepdims=True)
    xn = (x - mean) / jnp.sqrt(var + 1e-5) * gamma + beta
    qkv = xn @ wqkv
    inner = heads * dim_head
    q, k, v = jnp.split(qkv, 3, axis=-1)
    B, N, _ = x.shape

    def to_heads(t):
        return jnp.transpose(t.reshape(B, N, heads, dim_head), (0, 2, 1, 3))

    q, k, v = to_heads(q), to_heads(k), to_heads(v)
    dots = jnp.einsum("bhnd,bhmd->bhnm", q, k) * (dim_head ** -0.5)
    attn = jax.nn.softmax(dots, axis=-1)
    out = jnp.einsum("bhnm,bhmd->bhnd", attn, v)
    out = jnp.transpose(out, (0, 2, 1, 3)).reshape(B, N, inner)
    return out @ wout + bout


if __name__ == "__main__":
    # Small shapes consistent with the module: dim=32, heads=4, dim_head=16 -> inner_dim=64.
    B, N, dim = 2, 8, 32
    heads, dim_head = 4, 16
    inner = heads * dim_head

    key = jax.random.PRNGKey(0)
    kx, kqkv, kwo, kbo = jax.random.split(key, 4)

    x = jax.random.normal(kx, (B, N, dim), dtype=jnp.float32)

    # Deterministic synthetic parameters (LayerNorm default init: gamma=1, beta=0).
    gamma = jnp.ones((1, dim), dtype=jnp.float32)
    beta = jnp.zeros((1, dim), dtype=jnp.float32)
    wqkv = jax.random.normal(kqkv, (dim, 3 * inner), dtype=jnp.float32) * (dim ** -0.5)
    wout = jax.random.normal(kwo, (inner, dim), dtype=jnp.float32) * (inner ** -0.5)
    bout = jax.random.normal(kbo, (1, dim), dtype=jnp.float32) * 0.01

    y = attention_forward(x, gamma, beta, wqkv, wout, bout,
                          heads=heads, dim_head=dim_head)
    y = jax.block_until_ready(y)

    y_ref = reference_forward(x, gamma, beta, wqkv, wout, bout,
                              heads=heads, dim_head=dim_head)
    assert y.shape == (B, N, dim)
    # Tolerance accounts for bf16 MXU operands (f32 accumulation) vs. the all-f32 reference;
    # the softmax normalization itself is exact (no approximate reciprocal).
    assert jnp.allclose(y, y_ref, atol=5e-2, rtol=5e-2), "mismatch vs reference"

    print("KERNEL_OK")
</pallas_src>

<mosaic_0001>
module attributes {stable_mosaic.version = 11 : i64} {
  func.func @attention_kernel(%arg0: i32, %arg1: memref<16x32xf32, #tpu.memory_space<vmem>>, %arg2: memref<1x32xf32, #tpu.memory_space<vmem>>, %arg3: memref<1x32xf32, #tpu.memory_space<vmem>>, %arg4: memref<4x32x16xbf16, #tpu.memory_space<vmem>>, %arg5: memref<4x32x16xbf16, #tpu.memory_space<vmem>>, %arg6: memref<4x32x16xbf16, #tpu.memory_space<vmem>>, %arg7: memref<64x32xbf16, #tpu.memory_space<vmem>>, %arg8: memref<1x32xf32, #tpu.memory_space<vmem>>, %arg9: memref<16x32xf32, #tpu.memory_space<vmem>>) attributes {dimension_semantics = [#tpu.dimension_semantics<parallel>], iteration_bounds = array<i64: 1>, scalar_prefetch = 0 : i64, scratch_operands = 0 : i64, tpu.core_type = #tpu.core_type<tc>, window_params = [{transform_indices = @transform_0, window_bounds = array<i64: 16, 32>}, {pipeline_mode = #tpu.pipeline_mode<synchronous>, transform_indices = @transform_1, window_bounds = array<i64: 1, 32>}, {pipeline_mode = #tpu.pipeline_mode<synchronous>, transform_indices = @transform_2, window_bounds = array<i64: 1, 32>}, {pipeline_mode = #tpu.pipeline_mode<synchronous>, transform_indices = @transform_3, window_bounds = array<i64: 4, 32, 16>}, {pipeline_mode = #tpu.pipeline_mode<synchronous>, transform_indices = @transform_4, window_bounds = array<i64: 4, 32, 16>}, {pipeline_mode = #tpu.pipeline_mode<synchronous>, transform_indices = @transform_5, window_bounds = array<i64: 4, 32, 16>}, {pipeline_mode = #tpu.pipeline_mode<synchronous>, transform_indices = @transform_6, window_bounds = array<i64: 64, 32>}, {pipeline_mode = #tpu.pipeline_mode<synchronous>, transform_indices = @transform_7, window_bounds = array<i64: 1, 32>}, {transform_indices = @transform_8, window_bounds = array<i64: 16, 32>}]} {
    %c0 = arith.constant 0 : index
    %c0_0 = arith.constant 0 : index
    %0 = vector.load %arg1[%c0, %c0_0] : memref<16x32xf32, #tpu.memory_space<vmem>>, vector<16x32xf32>
    %cst = arith.constant dense<0.000000e+00> : vector<16xf32>
    %1 = vector.multi_reduction <add>, %0, %cst [1] : vector<16x32xf32> to vector<16xf32>
    %2 = vector.shape_cast %1 : vector<16xf32> to vector<16x1xf32>
    %cst_1 = arith.constant 3.200000e+01 : f32
    %3 = vector.broadcast %cst_1 : f32 to vector<16x1xf32>
    %4 = arith.divf %2, %3 : vector<16x1xf32>
    %5 = vector.broadcast %4 : vector<16x1xf32> to vector<16x32xf32>
    %6 = arith.subf %0, %5 : vector<16x32xf32>
    %7 = arith.mulf %6, %6 : vector<16x32xf32>
    %cst_2 = arith.constant dense<0.000000e+00> : vector<16xf32>
    %8 = vector.multi_reduction <add>, %7, %cst_2 [1] : vector<16x32xf32> to vector<16xf32>
    %9 = vector.shape_cast %8 : vector<16xf32> to vector<16x1xf32>
    %cst_3 = arith.constant 3.200000e+01 : f32
    %10 = vector.broadcast %cst_3 : f32 to vector<16x1xf32>
    %11 = arith.divf %9, %10 : vector<16x1xf32>
    %12 = vector.broadcast %4 : vector<16x1xf32> to vector<16x32xf32>
    %13 = arith.subf %0, %12 : vector<16x32xf32>
    %cst_4 = arith.constant 9.99999974E-6 : f32
    %14 = vector.broadcast %cst_4 : f32 to vector<16x1xf32>
    %15 = arith.addf %11, %14 : vector<16x1xf32>
    %16 = math.rsqrt %15 : vector<16x1xf32>
    %17 = vector.broadcast %16 : vector<16x1xf32> to vector<16x32xf32>
    %18 = arith.mulf %13, %17 : vector<16x32xf32>
    %c0_5 = arith.constant 0 : index
    %c0_6 = arith.constant 0 : index
    %19 = vector.load %arg2[%c0_5, %c0_6] : memref<1x32xf32, #tpu.memory_space<vmem>>, vector<1x32xf32>
    %20 = vector.broadcast %19 : vector<1x32xf32> to vector<16x32xf32>
    %21 = arith.mulf %18, %20 : vector<16x32xf32>
    %c0_7 = arith.constant 0 : index
    %c0_8 = arith.constant 0 : index
    %22 = vector.load %arg3[%c0_7, %c0_8] : memref<1x32xf32, #tpu.memory_space<vmem>>, vector<1x32xf32>
    %23 = vector.broadcast %22 : vector<1x32xf32> to vector<16x32xf32>
    %24 = arith.addf %21, %23 : vector<16x32xf32>
    %25 = arith.truncf %24 : vector<16x32xf32> to vector<16x32xbf16>
    %c0_9 = arith.constant 0 : index
    %c0_10 = arith.constant 0 : index
    %c0_11 = arith.constant 0 : index
    %26 = vector.load %arg4[%c0_9, %c0_10, %c0_11] : memref<4x32x16xbf16, #tpu.memory_space<vmem>>, vector<1x32x16xbf16>
    %27 = vector.shape_cast %26 : vector<1x32x16xbf16> to vector<32x16xbf16>
    %cst_12 = arith.constant dense<0.000000e+00> : vector<16x16xf32>
    %28 = tpu.matmul %25, %27, %cst_12 {dimension_numbers = #tpu.dot_dimension_numbers<[1], [0], [0], [1], [0, 0, 1, 1], [], []>} : vector<16x32xbf16>, vector<32x16xbf16>, vector<16x16xf32> -> vector<16x16xf32>
    %c1 = arith.constant 1 : index
    %c0_13 = arith.constant 0 : index
    %c0_14 = arith.constant 0 : index
    %29 = vector.load %arg4[%c1, %c0_13, %c0_14] : memref<4x32x16xbf16, #tpu.memory_space<vmem>>, vector<1x32x16xbf16>
    %30 = vector.shape_cast %29 : vector<1x32x16xbf16> to vector<32x16xbf16>
    %cst_15 = arith.constant dense<0.000000e+00> : vector<16x16xf32>
    %31 = tpu.matmul %25, %30, %cst_15 {dimension_numbers = #tpu.dot_dimension_numbers<[1], [0], [0], [1], [0, 0, 1, 1], [], []>} : vector<16x32xbf16>, vector<32x16xbf16>, vector<16x16xf32> -> vector<16x16xf32>
    %c2 = arith.constant 2 : index
    %c0_16 = arith.constant 0 : index
    %c0_17 = arith.constant 0 : index
    %32 = vector.load %arg4[%c2, %c0_16, %c0_17] : memref<4x32x16xbf16, #tpu.memory_space<vmem>>, vector<1x32x16xbf16>
    %33 = vector.shape_cast %32 : vector<1x32x16xbf16> to vector<32x16xbf16>
    %cst_18 = arith.constant dense<0.000000e+00> : vector<16x16xf32>
    %34 = tpu.matmul %25, %33, %cst_18 {dimension_numbers = #tpu.dot_dimension_numbers<[1], [0], [0], [1], [0, 0, 1, 1], [], []>} : vector<16x32xbf16>, vector<32x16xbf16>, vector<16x16xf32> -> vector<16x16xf32>
    %c3 = arith.constant 3 : index
    %c0_19 = arith.constant 0 : index
    %c0_20 = arith.constant 0 : index
    %35 = vector.load %arg4[%c3, %c0_19, %c0_20] : memref<4x32x16xbf16, #tpu.memory_space<vmem>>, vector<1x32x16xbf16>
    %36 = vector.shape_cast %35 : vector<1x32x16xbf16> to vector<32x16xbf16>
    %cst_21 = arith.constant dense<0.000000e+00> : vector<16x16xf32>
    %37 = tpu.matmul %25, %36, %cst_21 {dimension_numbers = #tpu.dot_dimension_numbers<[1], [0], [0], [1], [0, 0, 1, 1], [], []>} : vector<16x32xbf16>, vector<32x16xbf16>, vector<16x16xf32> -> vector<16x16xf32>
    %38 = vector.shape_cast %28 : vector<16x16xf32> to vector<1x16x16xf32>
    %39 = vector.shape_cast %31 : vector<16x16xf32> to vector<1x16x16xf32>
    %40 = vector.shape_cast %34 : vector<16x16xf32> to vector<1x16x16xf32>
    %41 = vector.shape_cast %37 : vector<16x16xf32> to vector<1x16x16xf32>
    %42 = tpu.concatenate %38, %39, %40, %41 in 0 : vector<1x16x16xf32>, vector<1x16x16xf32>, vector<1x16x16xf32>, vector<1x16x16xf32> -> vector<4x16x16xf32>
    %43 = arith.truncf %42 : vector<4x16x16xf32> to vector<4x16x16xbf16>
    %44 = vector.shape_cast %43 : vector<4x16x16xbf16> to vector<8x8x16xbf16>
    %c0_22 = arith.constant 0 : index
    %c0_23 = arith.constant 0 : index
    %c0_24 = arith.constant 0 : index
    %45 = vector.load %arg5[%c0_22, %c0_23, %c0_24] : memref<4x32x16xbf16, #tpu.memory_space<vmem>>, vector<1x32x16xbf16>
    %46 = vector.shape_cast %45 : vector<1x32x16xbf16> to vector<32x16xbf16>
    %cst_25 = arith.constant dense<0.000000e+00> : vector<16x16xf32>
    %47 = tpu.matmul %25, %46, %cst_25 {dimension_numbers = #tpu.dot_dimension_numbers<[1], [0], [0], [1], [0, 0, 1, 1], [], []>} : vector<16x32xbf16>, vector<32x16xbf16>, vector<16x16xf32> -> vector<16x16xf32>
    %c1_26 = arith.constant 1 : index
    %c0_27 = arith.constant 0 : index
    %c0_28 = arith.constant 0 : index
    %48 = vector.load %arg5[%c1_26, %c0_27, %c0_28] : memref<4x32x16xbf16, #tpu.memory_space<vmem>>, vector<1x32x16xbf16>
    %49 = vector.shape_cast %48 : vector<1x32x16xbf16> to vector<32x16xbf16>
    %cst_29 = arith.constant dense<0.000000e+00> : vector<16x16xf32>
    %50 = tpu.matmul %25, %49, %cst_29 {dimension_numbers = #tpu.dot_dimension_numbers<[1], [0], [0], [1], [0, 0, 1, 1], [], []>} : vector<16x32xbf16>, vector<32x16xbf16>, vector<16x16xf32> -> vector<16x16xf32>
    %c2_30 = arith.constant 2 : index
    %c0_31 = arith.constant 0 : index
    %c0_32 = arith.constant 0 : index
    %51 = vector.load %arg5[%c2_30, %c0_31, %c0_32] : memref<4x32x16xbf16, #tpu.memory_space<vmem>>, vector<1x32x16xbf16>
    %52 = vector.shape_cast %51 : vector<1x32x16xbf16> to vector<32x16xbf16>
    %cst_33 = arith.constant dense<0.000000e+00> : vector<16x16xf32>
    %53 = tpu.matmul %25, %52, %cst_33 {dimension_numbers = #tpu.dot_dimension_numbers<[1], [0], [0], [1], [0, 0, 1, 1], [], []>} : vector<16x32xbf16>, vector<32x16xbf16>, vector<16x16xf32> -> vector<16x16xf32>
    %c3_34 = arith.constant 3 : index
    %c0_35 = arith.constant 0 : index
    %c0_36 = arith.constant 0 : index
    %54 = vector.load %arg5[%c3_34, %c0_35, %c0_36] : memref<4x32x16xbf16, #tpu.memory_space<vmem>>, vector<1x32x16xbf16>
    %55 = vector.shape_cast %54 : vector<1x32x16xbf16> to vector<32x16xbf16>
    %cst_37 = arith.constant dense<0.000000e+00> : vector<16x16xf32>
    %56 = tpu.matmul %25, %55, %cst_37 {dimension_numbers = #tpu.dot_dimension_numbers<[1], [0], [0], [1], [0, 0, 1, 1], [], []>} : vector<16x32xbf16>, vector<32x16xbf16>, vector<16x16xf32> -> vector<16x16xf32>
    %57 = vector.shape_cast %47 : vector<16x16xf32> to vector<1x16x16xf32>
    %58 = vector.shape_cast %50 : vector<16x16xf32> to vector<1x16x16xf32>
    %59 = vector.shape_cast %53 : vector<16x16xf32> to vector<1x16x16xf32>
    %60 = vector.shape_cast %56 : vector<16x16xf32> to vector<1x16x16xf32>
    %61 = tpu.concatenate %57, %58, %59, %60 in 0 : vector<1x16x16xf32>, vector<1x16x16xf32>, vector<1x16x16xf32>, vector<1x16x16xf32> -> vector<4x16x16xf32>
    %62 = arith.truncf %61 : vector<4x16x16xf32> to vector<4x16x16xbf16>
    %63 = vector.shape_cast %62 : vector<4x16x16xbf16> to vector<8x8x16xbf16>
    %c0_38 = arith.constant 0 : index
    %c0_39 = arith.constant 0 : index
    %c0_40 = arith.constant 0 : index
    %64 = vector.load %arg6[%c0_38, %c0_39, %c0_40] : memref<4x32x16xbf16, #tpu.memory_space<vmem>>, vector<1x32x16xbf16>
    %65 = vector.shape_cast %64 : vector<1x32x16xbf16> to vector<32x16xbf16>
    %cst_41 = arith.constant dense<0.000000e+00> : vector<16x16xf32>
    %66 = tpu.matmul %25, %65, %cst_41 {dimension_numbers = #tpu.dot_dimension_numbers<[1], [0], [0], [1], [0, 0, 1, 1], [], []>} : vector<16x32xbf16>, vector<32x16xbf16>, vector<16x16xf32> -> vector<16x16xf32>
    %c1_42 = arith.constant 1 : index
    %c0_43 = arith.constant 0 : index
    %c0_44 = arith.constant 0 : index
    %67 = vector.load %arg6[%c1_42, %c0_43, %c0_44] : memref<4x32x16xbf16, #tpu.memory_space<vmem>>, vector<1x32x16xbf16>
    %68 = vector.shape_cast %67 : vector<1x32x16xbf16> to vector<32x16xbf16>
    %cst_45 = arith.constant dense<0.000000e+00> : vector<16x16xf32>
    %69 = tpu.matmul %25, %68, %cst_45 {dimension_numbers = #tpu.dot_dimension_numbers<[1], [0], [0], [1], [0, 0, 1, 1], [], []>} : vector<16x32xbf16>, vector<32x16xbf16>, vector<16x16xf32> -> vector<16x16xf32>
    %c2_46 = arith.constant 2 : index
    %c0_47 = arith.constant 0 : index
    %c0_48 = arith.constant 0 : index
    %70 = vector.load %arg6[%c2_46, %c0_47, %c0_48] : memref<4x32x16xbf16, #tpu.memory_space<vmem>>, vector<1x32x16xbf16>
    %71 = vector.shape_cast %70 : vector<1x32x16xbf16> to vector<32x16xbf16>
    %cst_49 = arith.constant dense<0.000000e+00> : vector<16x16xf32>
    %72 = tpu.matmul %25, %71, %cst_49 {dimension_numbers = #tpu.dot_dimension_numbers<[1], [0], [0], [1], [0, 0, 1, 1], [], []>} : vector<16x32xbf16>, vector<32x16xbf16>, vector<16x16xf32> -> vector<16x16xf32>
    %c3_50 = arith.constant 3 : index
    %c0_51 = arith.constant 0 : index
    %c0_52 = arith.constant 0 : index
    %73 = vector.load %arg6[%c3_50, %c0_51, %c0_52] : memref<4x32x16xbf16, #tpu.memory_space<vmem>>, vector<1x32x16xbf16>
    %74 = vector.shape_cast %73 : vector<1x32x16xbf16> to vector<32x16xbf16>
    %cst_53 = arith.constant dense<0.000000e+00> : vector<16x16xf32>
    %75 = tpu.matmul %25, %74, %cst_53 {dimension_numbers = #tpu.dot_dimension_numbers<[1], [0], [0], [1], [0, 0, 1, 1], [], []>} : vector<16x32xbf16>, vector<32x16xbf16>, vector<16x16xf32> -> vector<16x16xf32>
    %76 = vector.shape_cast %66 : vector<16x16xf32> to vector<1x16x16xf32>
    %77 = vector.shape_cast %69 : vector<16x16xf32> to vector<1x16x16xf32>
    %78 = vector.shape_cast %72 : vector<16x16xf32> to vector<1x16x16xf32>
    %79 = vector.shape_cast %75 : vector<16x16xf32> to vector<1x16x16xf32>
    %80 = tpu.concatenate %76, %77, %78, %79 in 0 : vector<1x16x16xf32>, vector<1x16x16xf32>, vector<1x16x16xf32>, vector<1x16x16xf32> -> vector<4x16x16xf32>
    %81 = arith.truncf %80 : vector<4x16x16xf32> to vector<4x16x16xbf16>
    %82 = vector.shape_cast %81 : vector<4x16x16xbf16> to vector<8x8x16xbf16>
    "tpu.trace_start"() <{level = 10 : i32, message = "gnd,gmd->gnm"}> : () -> ()
    %cst_54 = arith.constant dense<0.000000e+00> : vector<8x8x8xf32>
    %83 = tpu.matmul %44, %63, %cst_54 {dimension_numbers = #tpu.dot_dimension_numbers<[2], [2], [1], [1], [0, 0, 0, 1, 1, 1], [0], [0]>} : vector<8x8x16xbf16>, vector<8x8x16xbf16>, vector<8x8x8xf32> -> vector<8x8x8xf32>
    "tpu.trace_stop"() : () -> ()
    %cst_55 = arith.constant dense<0xFF800000> : vector<8x8xf32>
    %84 = vector.multi_reduction <maximumf>, %83, %cst_55 [2] : vector<8x8x8xf32> to vector<8x8xf32>
    %85 = vector.shape_cast %84 : vector<8x8xf32> to vector<8x8x1xf32>
    %86 = vector.broadcast %85 : vector<8x8x1xf32> to vector<8x8x8xf32>
    %87 = arith.subf %83, %86 : vector<8x8x8xf32>
    %88 = math.exp %87 : vector<8x8x8xf32>
    %cst_56 = arith.constant dense<0.000000e+00> : vector<8x8xf32>
    %89 = vector.multi_reduction <add>, %88, %cst_56 [2] : vector<8x8x8xf32> to vector<8x8xf32>
    %90 = vector.shape_cast %89 : vector<8x8xf32> to vector<8x8x1xf32>
    %91 = arith.truncf %88 : vector<8x8x8xf32> to vector<8x8x8xbf16>
    "tpu.trace_start"() <{level = 10 : i32, message = "gnm,gmd->gnd"}> : () -> ()
    %cst_57 = arith.constant dense<0.000000e+00> : vector<8x8x16xf32>
    %92 = tpu.matmul %91, %82, %cst_57 {dimension_numbers = #tpu.dot_dimension_numbers<[2], [1], [1], [2], [0, 0, 0, 1, 1, 2], [0], [0]>} : vector<8x8x8xbf16>, vector<8x8x16xbf16>, vector<8x8x16xf32> -> vector<8x8x16xf32>
    "tpu.trace_stop"() : () -> ()
    %93 = vector.broadcast %90 : vector<8x8x1xf32> to vector<8x8x16xf32>
    %94 = arith.divf %92, %93 : vector<8x8x16xf32>
    %95 = arith.truncf %94 : vector<8x8x16xf32> to vector<8x8x16xbf16>
    %96 = vector.shape_cast %95 : vector<8x8x16xbf16> to vector<4x16x16xbf16>
    %97 = vector.extract_strided_slice %96 {offsets = [0, 0, 0], sizes = [1, 16, 16], strides = [1, 1, 1]} : vector<4x16x16xbf16> to vector<1x16x16xbf16>
    %98 = vector.shape_cast %97 : vector<1x16x16xbf16> to vector<16x16xbf16>
    %99 = vector.extract_strided_slice %96 {offsets = [1, 0, 0], sizes = [1, 16, 16], strides = [1, 1, 1]} : vector<4x16x16xbf16> to vector<1x16x16xbf16>
    %100 = vector.shape_cast %99 : vector<1x16x16xbf16> to vector<16x16xbf16>
    %101 = vector.extract_strided_slice %96 {offsets = [2, 0, 0], sizes = [1, 16, 16], strides = [1, 1, 1]} : vector<4x16x16xbf16> to vector<1x16x16xbf16>
    %102 = vector.shape_cast %101 : vector<1x16x16xbf16> to vector<16x16xbf16>
    %103 = vector.extract_strided_slice %96 {offsets = [3, 0, 0], sizes = [1, 16, 16], strides = [1, 1, 1]} : vector<4x16x16xbf16> to vector<1x16x16xbf16>
    %104 = vector.shape_cast %103 : vector<1x16x16xbf16> to vector<16x16xbf16>
    %105 = tpu.concatenate %98, %100, %102, %104 in 1 : vector<16x16xbf16>, vector<16x16xbf16>, vector<16x16xbf16>, vector<16x16xbf16> -> vector<16x64xbf16>
    %c0_58 = arith.constant 0 : index
    %c0_59 = arith.constant 0 : index
    %106 = vector.load %arg7[%c0_58, %c0_59] : memref<64x32xbf16, #tpu.memory_space<vmem>>, vector<64x32xbf16>
    %cst_60 = arith.constant dense<0.000000e+00> : vector<16x32xf32>
    %107 = tpu.matmul %105, %106, %cst_60 {dimension_numbers = #tpu.dot_dimension_numbers<[1], [0], [0], [1], [0, 0, 1, 1], [], []>} : vector<16x64xbf16>, vector<64x32xbf16>, vector<16x32xf32> -> vector<16x32xf32>
    %c0_61 = arith.constant 0 : index
    %c0_62 = arith.constant 0 : index
    %108 = vector.load %arg8[%c0_61, %c0_62] : memref<1x32xf32, #tpu.memory_space<vmem>>, vector<1x32xf32>
    %109 = vector.broadcast %108 : vector<1x32xf32> to vector<16x32xf32>
    %110 = arith.addf %107, %109 : vector<16x32xf32>
    %c0_63 = arith.constant 0 : index
    %c0_64 = arith.constant 0 : index
    %111 = vector.load %arg9[%c0_63, %c0_64] : memref<16x32xf32, #tpu.memory_space<vmem>>, vector<16x32xf32>
    tpu.vector_store %arg9[%c0_63, %c0_64], %110 {strides = array<i32>} : memref<16x32xf32, #tpu.memory_space<vmem>>, vector<16x32xf32>,
    return
  }
  func.func @transform_0(%arg0: i32) -> (i32, i32) {
    %c0_i32 = arith.constant 0 : i32
    %c0_i32_0 = arith.constant 0 : i32
    return %arg0, %c0_i32 : i32, i32
  }
  func.func @transform_1(%arg0: i32) -> (i32, i32) {
    %c0_i32 = arith.constant 0 : i32
    %c0_i32_0 = arith.constant 0 : i32
    %c0_i32_1 = arith.constant 0 : i32
    return %c0_i32, %c0_i32_0 : i32, i32
  }
  func.func @transform_2(%arg0: i32) -> (i32, i32) {
    %c0_i32 = arith.constant 0 : i32
    %c0_i32_0 = arith.constant 0 : i32
    %c0_i32_1 = arith.constant 0 : i32
    return %c0_i32, %c0_i32_0 : i32, i32
  }
  func.func @transform_3(%arg0: i32) -> (i32, i32, i32) {
    %c0_i32 = arith.constant 0 : i32
    %c0_i32_0 = arith.constant 0 : i32
    %c0_i32_1 = arith.constant 0 : i32
    %c0_i32_2 = arith.constant 0 : i32
    return %c0_i32, %c0_i32_0, %c0_i32_1 : i32, i32, i32
  }
  func.func @transform_4(%arg0: i32) -> (i32, i32, i32) {
    %c0_i32 = arith.constant 0 : i32
    %c0_i32_0 = arith.constant 0 : i32
    %c0_i32_1 = arith.constant 0 : i32
    %c0_i32_2 = arith.constant 0 : i32
    return %c0_i32, %c0_i32_0, %c0_i32_1 : i32, i32, i32
  }
  func.func @transform_5(%arg0: i32) -> (i32, i32, i32) {
    %c0_i32 = arith.constant 0 : i32
    %c0_i32_0 = arith.constant 0 : i32
    %c0_i32_1 = arith.constant 0 : i32
    %c0_i32_2 = arith.constant 0 : i32
    return %c0_i32, %c0_i32_0, %c0_i32_1 : i32, i32, i32
  }
  func.func @transform_6(%arg0: i32) -> (i32, i32) {
    %c0_i32 = arith.constant 0 : i32
    %c0_i32_0 = arith.constant 0 : i32
    %c0_i32_1 = arith.constant 0 : i32
    return %c0_i32, %c0_i32_0 : i32, i32
  }
  func.func @transform_7(%arg0: i32) -> (i32, i32) {
    %c0_i32 = arith.constant 0 : i32
    %c0_i32_0 = arith.constant 0 : i32
    %c0_i32_1 = arith.constant 0 : i32
    return %c0_i32, %c0_i32_0 : i32, i32
  }
  func.func @transform_8(%arg0: i32) -> (i32, i32) {
    %c0_i32 = arith.constant 0 : i32
    %c0_i32_0 = arith.constant 0 : i32
    return %arg0, %c0_i32 : i32, i32
  }
}

</mosaic_0001>

<bundles_post_ra>
// kernel: tpu_custom_call.1
= control target key start
LH: loop header
LB: loop body
LE: loop exit
PB: predicated region body
PF: predicated region fallthrough
CT: control target
= control target key end

     0   :  { %vm33_vm0 = vcmask 261120   ;;  %s2753_s0 = inlined_call_operand.vmem [shape: f32[16,32], index: 0, kind: input, shape index: {}]   ;;  %s2754_s1 = inlined_call_operand.vmem [shape: f32[1,32], index: 1, kind: input, shape index: {}]   ;;  %s2755_s2 = inlined_call_operand.vmem [shape: f32[1,32], index: 2, kind: input, shape index: {}]   ;;  %s2756_s3 = inlined_call_operand.vmem [shape: bf16[4,32,16], index: 3, kind: input, shape index: {}]   ;;  %s2757_s4 = inlined_call_operand.vmem [shape: bf16[4,32,16], index: 4, kind: input, shape index: {}]   ;;  %s2758_s5 = inlined_call_operand.vmem [shape: bf16[4,32,16], index: 5, kind: input, shape index: {}]   ;;  %s2759_s6 = inlined_call_operand.vmem [shape: bf16[64,32], index: 6, kind: input, shape index: {}]   ;;  %s2760_s7 = inlined_call_operand.vmem [shape: f32[1,32], index: 7, kind: input, shape index: {}]   ;;  %s2761_s8 = inlined_call_operand.hbm [shape: f32[16,32], index: 8, kind: output, shape index: {}]  }
   0x1   :  { %v31_v0 = vld [vmem:[%s2753_s0] sm:$0xff]  ;;  %v32_v1 = vld [vmem:[%s2753_s0 + $0x8] sm:$0xff] }
   0x2   :  { %v34_v2 = vsel %vm33_vm0, %v31_v0, 0.0  ;;  %v37_v3 = vsel %vm33_vm0, %v32_v1, 0.0 }
   0x3   :  { %35 = vadd.xlane.f32.xlu0 %v34_v2 }
   0x7   :  { %38 = vadd.xlane.f32.xlu0 %v37_v3 }
   0x8   :  { %13 = vsyncpa [#allocation3], 0  ;;  %v2263_v14 = vld [vmem:[%s2756_s3 + $0x8] sm:$0xff]   ;;  %v2349_v16 = vmov 0.0   ;;  %v2265_v17 = vld [vmem:[%s2756_s3] sm:$0xff]   ;;  %vm2350_vm1 = vmmov 0  }
   0x9   :  { %v2264_v15 = vld [vmem:[%s2756_s3 + $0x28] sm:$0xff]   ;;  %2051 = vmatprep.subr.bf16.mxu1 %v2349_v16  ;;  %2067 = vmatprep.subr.bf16.mxu0 %v2349_v16  ;;  %v2266_v18 = vld [vmem:[%s2756_s3 + $0x20] sm:$0xff]   ;;  %v2267_v35 = vld [vmem:[%s2756_s3 + $0x18] sm:$0xff]   ;;  %vm848_vm2 = vcmask 130048   ;;  %vm1301_vm3 = vcmask 1043456   ;;  %vm1217_vm4 = vcmask 64512  }
   0xa   :  { %2052 = vmatpush3.bf16.msra.mxu1 %v2263_v14  ;;  %2068 = vmatpush3.bf16.msra.mxu0 %v2264_v15  ;;  %v1826_v27 = vld [vmem:[%s2754_s1] ss:$0 sm:$0xff]  ;;  %v2268_v36 = vld [vmem:[%s2757_s4 + $0x8] sm:$0xff]   ;;  %v2269_v38 = vld [vmem:[%s2756_s3 + $0x10] sm:$0xff]   ;;  %s2351_s14 = smov 16   ;;  %s2353_s15 = smov 48  }
   0xb   :  { %2053 = vmatprep.subr.bf16.mxu1 %v2349_v16  ;;  %2069 = vmatprep.subr.bf16.mxu0 %v2349_v16  ;;  %v1827_v31 = vld [vmem:[%s2755_s2] ss:$0 sm:$0xff]  ;;  %v2271_v40 = vld [vmem:[%s2756_s3 + $0x38] sm:$0xff]   ;;  %v2272_v41 = vld [vmem:[%s2757_s4 + $0x28] sm:$0xff]   ;;  %vm1722_vm5 = vcmask 392192   ;;  %vm1764_vm6 = vcmask 523264  }
   0xc   :  { %2055 = vmatprep.mubr.msk.bf16.mxu1 %vm2350_vm1, %v2349_v16  ;;  %2071 = vmatprep.mubr.msk.bf16.mxu0 %vm2350_vm1, %v2349_v16  ;;  %v2270_v39 = vld [vmem:[%s2757_s4] sm:$0xff]   ;;  %v2273_v42 = vld [vmem:[%s2756_s3 + $0x30] sm:$0xff]   ;;  %v2275_v44 = vld [vmem:[%s2757_s4 + $0x18] sm:$0xff]   ;;  %s2354_s18 = smov [#allocation2]  }
   0xd   :  { %v2274_v43 = vld [vmem:[%s2757_s4 + $0x20] sm:$0xff]   ;;  %v2276_v45 = vld [vmem:[%s2758_s5 + $0x8] sm:$0xff]   ;;  %v2277_v46 = vld [vmem:[%s2757_s4 + $0x10] sm:$0xff]   ;;  %s1815_s19 = sshll.u32 %s2354_s18, 4  ;;  %s1816_s19 = int_to_ptr.vmem [resolvable:$true] %s1815_s19 }
   0xe   :  { %2054 = vmatpush3.bf16.msra.mxu1 %v2265_v17  ;;  %2070 = vmatpush3.bf16.msra.mxu0 %v2266_v18  ;;  %v2278_v47 = vld [vmem:[%s2758_s5] sm:$0xff]   ;;  %v2279_v48 = vld [vmem:[%s2757_s4 + $0x38] sm:$0xff]   ;;  %v2280_v49 = vld [vmem:[%s2758_s5 + $0x28] sm:$0xff]   ;;  %s2327_s20 = scalar_lea.vmem %s1816_s19, 256  ;;  %p2332_p1 = scmp.lt.s32.totalorder %s1816_s19, %s1816_s19 }
   0xf   :  { %2059 = vmatprep.subr.bf16.mxu1 %v2349_v16  ;;  %2083 = vmatprep.subr.bf16.mxu0 %v2349_v16  ;;  %v2281_v50 = vld [vmem:[%s2757_s4 + $0x30] sm:$0xff]   ;;  %v2282_v51 = vld [vmem:[%s2758_s5 + $0x20] sm:$0xff]   ;;  %v2283_v52 = vld [vmem:[%s2758_s5 + $0x18] sm:$0xff]   ;;  %p2328_p0 = scmp.ne.s32.totalorder %s1816_s19, %s2327_s20  ;;  %p2333_p2 = scmp.lt.s32.totalorder %s2327_s20, %s2327_s20 }
  0x10   :  { %v2284_v53 = vld [vmem:[%s2758_s5 + $0x10] sm:$0xff]   ;;  %v2285_v54 = vld [vmem:[%s2758_s5 + $0x38] sm:$0xff]  }
  0x11   :  { %v2286_v55 = vld [vmem:[%s2758_s5 + $0x30] sm:$0xff]   ;;  %p2334_p3 = por %p2333_p2, %p2332_p1 }
  0x13   :  { %p2335_p4 = pnand %p2334_p3, %p2328_p0 }
  0x8c   :  { %v36_v4 = vpop.xlane.xlu0 %35 }
  0x8d   :  { %v41_v5 = vmul.f32 0.03125, %v36_v4 }
  0x8f   :  { %v43_v6 = vsub.f32 %v31_v0, %v41_v5 }
  0x90   :  { %v39_v7 = vpop.xlane.xlu0 %38 }
  0x91   :  { %v42_v8 = vmul.f32 0.03125, %v39_v7  ;;  %v45_v9 = vmul.f32 %v43_v6, %v43_v6 }
  0x93   :  { %v44_v10 = vsub.f32 %v32_v1, %v42_v8  ;;  %v47_v11 = vsel %vm33_vm0, %v45_v9, 0.0 }
  0x94   :  { %48 = vadd.xlane.f32.xlu1 %v47_v11 }
  0x95   :  { %v46_v12 = vmul.f32 %v44_v10, %v44_v10 }
  0x97   :  { %v50_v13 = vsel %vm33_vm0, %v46_v12, 0.0 }
  0x98   :  { %51 = vadd.xlane.f32.xlu1 %v50_v13 }
 0x11d   :  { %v49_v19 = vpop.xlane.xlu1 %48 }
 0x11e   :  { %v53_v20 = vmul.f32 0.03125, %v49_v19 }
 0x120   :  { %v55_v21 = vadd.f32 1e-05, %v53_v20 }
 0x121   :  { %v52_v22 = vpop.xlane.xlu1 %51 }
 0x122   :  { %2291 = vrsqrt.f32 %v55_v21  ;;  %v54_v23 = vmul.f32 0.03125, %v52_v22 }
 0x124   :  { %v56_v24 = vadd.f32 1e-05, %v54_v23 }
 0x126   :  { %2293 = vrsqrt.f32 %v56_v24 }
 0x12f   :  { %v2292_v25 = vpop.eup %2291 }
 0x130   :  { %v59_v26 = vmul.f32 %v2292_v25, %v43_v6 }
 0x132   :  { %v68_v29 = vmul.f32 %v1826_v27, %v59_v26 }
 0x133   :  { %v2294_v28 = vpop.eup %2293 }
 0x134   :  { %v60_v30 = vmul.f32 %v2294_v28, %v44_v10  ;;  %v77_v33 = vadd.f32 %v1827_v31, %v68_v29 }
 0x136   :  { %v69_v32 = vmul.f32 %v1826_v27, %v60_v30 }
 0x138   :  { %v78_v34 = vadd.f32 %v1827_v31, %v69_v32 }
 0x13a   :  { %v2446_v37 = vpack.c.bf16 %v78_v34, %v77_v33 }
 0x13c   :  { %2056 = vmatmul.mubr.msk.bf16.vlgmr.msra.gmra.mxu1 %vm33_vm0, %v2446_v37  ;;  %2072 = vmatmul.mubr.msk.bf16.vlgmr.msra.gmra.mxu0 %vm33_vm0, %v2446_v37 }
 0x13d   :  { %2060 = vmatpush3.bf16.msra.mxu1 %v2267_v35  ;;  %2084 = vmatpush3.bf16.msra.mxu0 %v2268_v36 }
 0x13e   :  { %2061 = vmatprep.subr.bf16.mxu1 %v2349_v16  ;;  %2085 = vmatprep.subr.bf16.mxu0 %v2349_v16 }
 0x13f   :  { %2063 = vmatprep.mubr.msk.bf16.mxu1 %vm2350_vm1, %v2349_v16  ;;  %2087 = vmatprep.mubr.msk.bf16.mxu0 %vm2350_vm1, %v2349_v16 }
 0x141   :  { %2062 = vmatpush3.bf16.msra.mxu1 %v2269_v38  ;;  %2086 = vmatpush3.bf16.msra.mxu0 %v2270_v39 }
 0x142   :  { %2075 = vmatprep.subr.bf16.mxu1 %v2349_v16  ;;  %2099 = vmatprep.subr.bf16.mxu0 %v2349_v16 }
 0x144   :  { %2064 = vmatmul.mubr.msk.bf16.vlgmr.msra.gmra.mxu1 %vm33_vm0, %v2446_v37  ;;  %2088 = vmatmul.mubr.msk.bf16.vlgmr.msra.gmra.mxu0 %vm33_vm0, %v2446_v37 }
 0x145   :  { %2076 = vmatpush3.bf16.msra.mxu1 %v2271_v40  ;;  %2100 = vmatpush3.bf16.msra.mxu0 %v2272_v41 }
 0x146   :  { %2077 = vmatprep.subr.bf16.mxu1 %v2349_v16  ;;  %2101 = vmatprep.subr.bf16.mxu0 %v2349_v16 }
 0x147   :  { %2079 = vmatprep.mubr.msk.bf16.mxu1 %vm2350_vm1, %v2349_v16  ;;  %2103 = vmatprep.mubr.msk.bf16.mxu0 %vm2350_vm1, %v2349_v16 }
 0x149   :  { %2078 = vmatpush3.bf16.msra.mxu1 %v2273_v42  ;;  %2102 = vmatpush3.bf16.msra.mxu0 %v2274_v43 }
 0x14a   :  { %2091 = vmatprep.subr.bf16.mxu1 %v2349_v16  ;;  %2115 = vmatprep.subr.bf16.mxu0 %v2349_v16 }
 0x14c   :  { %2080 = vmatmul.mubr.msk.bf16.vlgmr.msra.gmra.mxu1 %vm33_vm0, %v2446_v37  ;;  %2104 = vmatmul.mubr.msk.bf16.vlgmr.msra.gmra.mxu0 %vm33_vm0, %v2446_v37 }
 0x14d   :  { %2092 = vmatpush3.bf16.msra.mxu1 %v2275_v44  ;;  %2116 = vmatpush3.bf16.msra.mxu0 %v2276_v45 }
 0x14e   :  { %2093 = vmatprep.subr.bf16.mxu1 %v2349_v16  ;;  %2117 = vmatprep.subr.bf16.mxu0 %v2349_v16 }
 0x14f   :  { %2095 = vmatprep.mubr.msk.bf16.mxu1 %vm2350_vm1, %v2349_v16  ;;  %2119 = vmatprep.mubr.msk.bf16.mxu0 %vm2350_vm1, %v2349_v16 }
 0x151   :  { %2094 = vmatpush3.bf16.msra.mxu1 %v2277_v46  ;;  %2118 = vmatpush3.bf16.msra.mxu0 %v2278_v47 }
 0x152   :  { %2107 = vmatprep.subr.bf16.mxu1 %v2349_v16  ;;  %2131 = vmatprep.subr.bf16.mxu0 %v2349_v16 }
 0x154   :  { %2096 = vmatmul.mubr.msk.bf16.vlgmr.msra.gmra.mxu1 %vm33_vm0, %v2446_v37  ;;  %2120 = vmatmul.mubr.msk.bf16.vlgmr.msra.gmra.mxu0 %vm33_vm0, %v2446_v37 }
 0x155   :  { %2108 = vmatpush3.bf16.msra.mxu1 %v2279_v48  ;;  %2132 = vmatpush3.bf16.msra.mxu0 %v2280_v49 }
 0x156   :  { %2109 = vmatprep.subr.bf16.mxu1 %v2349_v16  ;;  %2133 = vmatprep.subr.bf16.mxu0 %v2349_v16 }
 0x157   :  { %2111 = vmatprep.mubr.msk.bf16.mxu1 %vm2350_vm1, %v2349_v16  ;;  %2135 = vmatprep.mubr.msk.bf16.mxu0 %vm2350_vm1, %v2349_v16 }
 0x159   :  { %2110 = vmatpush3.bf16.msra.mxu1 %v2281_v50  ;;  %2134 = vmatpush3.bf16.msra.mxu0 %v2282_v51 }
 0x15a   :  { %2123 = vmatprep.subr.bf16.mxu1 %v2349_v16  ;;  %2147 = vmatprep.subr.bf16.mxu0 %v2349_v16 }
 0x15c   :  { %2112 = vmatmul.mubr.msk.bf16.vlgmr.msra.gmra.mxu1 %vm33_vm0, %v2446_v37  ;;  %2136 = vmatmul.mubr.msk.bf16.vlgmr.msra.gmra.mxu0 %vm33_vm0, %v2446_v37 }
 0x15d   :  { %2124 = vmatpush3.bf16.msra.mxu1 %v2283_v52  ;;  %2127 = vmatprep.mubr.msk.bf16.mxu1 %vm2350_vm1, %v2349_v16 }
 0x15e   :  { %2125 = vmatprep.subr.bf16.mxu1 %v2349_v16  ;;  %2149 = vmatprep.mubr.msk.bf16.mxu0 %vm2350_vm1, %v2349_v16 }
 0x161   :  { %2126 = vmatpush3.bf16.msra.mxu1 %v2284_v53 }
 0x162   :  { %2139 = vmatprep.subr.bf16.mxu1 %v2349_v16 }
 0x164   :  { %2128 = vmatmul.mubr.msk.bf16.vlgmr.msra.gmra.mxu1 %vm33_vm0, %v2446_v37 }
 0x165   :  { %2140 = vmatpush3.bf16.msra.mxu1 %v2285_v54  ;;  %2143 = vmatprep.mubr.msk.bf16.mxu1 %vm2350_vm1, %v2349_v16 }
 0x166   :  { %2141 = vmatprep.subr.bf16.mxu1 %v2349_v16 }
 0x169   :  { %2142 = vmatpush3.bf16.msra.mxu1 %v2286_v55 }
 0x16a   :  { %2153 = vmatprep.subr.bf16.mxu1 %v2349_v16 }
 0x16c   :  { %2144 = vmatmul.mubr.msk.bf16.vlgmr.msra.gmra.mxu1 %vm33_vm0, %v2446_v37 }
 0x16d   :  { %2155 = vmatprep.mubr.msk.bf16.mxu1 %vm2350_vm1, %v2349_v16 }
 0x1fc   :  { %v133_v56 = vpop.f32.mrf.mxu1  ;;  %v2570_v57 = vpop.f32.mrf.mxu0 }
 0x1fd   :  { %v1950_v14 = vpack.c.bf16 %v133_v56, %v133_v56  ;;  %v1954_v55 = vpack.c.bf16 %v2570_v57, %v2570_v57 }
 0x1fe   :  { %v2057_v58 = vpop.f32.mrf.mxu1  ;;  %v2073_v59 = vpop.f32.mrf.mxu0 }
 0x200   :  { %v136_v60 = vpop.f32.mrf.mxu1  ;;  %v2572_v61 = vpop.f32.mrf.mxu0 }
 0x201   :  { %v1951_v20 = vpack.c.bf16 %v136_v60, %v136_v60  ;;  %v1955_v57 = vpack.c.bf16 %v2572_v61, %v2572_v61 }
 0x202   :  { %v2058_v62 = vpop.f32.mrf.mxu1  ;;  %v2074_v63 = vpop.f32.mrf.mxu0 }
 0x204   :  { %v191_v0 = vpop.f32.mrf.mxu1  ;;  %v388_v1 = vpop.f32.mrf.mxu0 }
 0x205   :  { %v1958_v2 = vpack.c.bf16 %v388_v1, %v388_v1  ;;  %v1952_v38 = vpack.c.bf16 %v191_v0, %v191_v0 }
 0x206   :  { %v2065_v3 = vpop.f32.mrf.mxu1  ;;  %v2089_v4 = vpop.f32.mrf.mxu0 }
 0x207   :  { %v853_v5 = vsel %vm848_vm2, %v1958_v2, 0 }
 0x208   :  { %v2575_v6 = vpop.f32.mrf.mxu1  ;;  %v391_v7 = vpop.f32.mrf.mxu0  ;;  %2148 = vmatpush3.bf16.xpose.msra.mxu0 %v853_v5 }
 0x209   :  { %v1959_v8 = vpack.c.bf16 %v391_v7, %v391_v7  ;;  %2159 = vmatprep.subr.bf16.mxu0 %v2349_v16  ;;  %v1953_v47 = vpack.c.bf16 %v2575_v6, %v2575_v6 }
 0x20a   :  { %v2066_v9 = vpop.f32.mrf.mxu1  ;;  %v2090_v10 = vpop.f32.mrf.mxu0 }
 0x20b   :  { %v899_v11 = vsel %vm848_vm2, %v1959_v8, 0 }
 0x20c   :  { %v2579_v12 = vpop.f32.mrf.mxu1  ;;  %v504_v13 = vpop.f32.mrf.mxu0  ;;  %2154 = vmatpush3.bf16.xpose.msra.mxu1 %v899_v11 }
 0x20d   :  { %2165 = vmatprep.subr.bf16.mxu1 %v2349_v16  ;;  %v1962_v34 = vpack.c.bf16 %v504_v13, %v504_v13  ;;  %v1956_v61 = vpack.c.bf16 %v2579_v12, %v2579_v12 }
 0x20e   :  { %v2081_v15 = vpop.f32.mrf.mxu1  ;;  %v2105_v17 = vpop.f32.mrf.mxu0 }
 0x20f   :  { %2150 = vmatmul.mubr.msk.bf16.vlgmr.msra.gmra.mxu0 %vm848_vm2, %v1950_v14  ;;  %v1037_v42 = vsel %vm848_vm2, %v1962_v34, 0 }
 0x210   :  { %v2583_v18 = vpop.f32.mrf.mxu1  ;;  %v507_v19 = vpop.f32.mrf.mxu0  ;;  %2161 = vmatprep.mubr.msk.bf16.mxu0 %vm2350_vm1, %v2349_v16 }
 0x211   :  { %v1963_v43 = vpack.c.bf16 %v507_v19, %v507_v19  ;;  %v1957_v12 = vpack.c.bf16 %v2583_v18, %v2583_v18 }
 0x212   :  { %v2082_v21 = vpop.f32.mrf.mxu1  ;;  %v2106_v22 = vpop.f32.mrf.mxu0 }
 0x213   :  { %2156 = vmatmul.mubr.msk.bf16.vlgmr.msra.gmra.mxu1 %vm848_vm2, %v1951_v20  ;;  %v1083_v51 = vsel %vm848_vm2, %v1963_v43, 0 }
 0x214   :  { %v446_v23 = vpop.f32.mrf.mxu1  ;;  %v2588_v24 = vpop.f32.mrf.mxu0  ;;  %2167 = vmatprep.mubr.msk.bf16.mxu1 %vm2350_vm1, %v2349_v16 }
 0x215   :  { %v1960_v25 = vpack.c.bf16 %v446_v23, %v446_v23  ;;  %v1966_v2 = vpack.c.bf16 %v2588_v24, %v2588_v24 }
 0x216   :  { %v2097_v26 = vpop.f32.mrf.mxu1  ;;  %v2121_v27 = vpop.f32.mrf.mxu0 }
 0x217   :  { %v945_v28 = vsel %vm848_vm2, %v1960_v25, 0  ;;  %v1303_v8 = vsel %vm1301_vm3, %v1966_v2, 0 }
 0x218   :  { %v449_v29 = vpop.f32.mrf.mxu1  ;;  %v2593_v30 = vpop.f32.mrf.mxu0  ;;  %2160 = vmatpush3.bf16.xpose.msra.mxu0 %v945_v28 }
 0x219   :  { %v1961_v31 = vpack.c.bf16 %v449_v29, %v449_v29  ;;  %2171 = vmatprep.subr.bf16.mxu0 %v2349_v16  ;;  %v1967_v9 = vpack.c.bf16 %v2593_v30, %v2593_v30 }
 0x21a   :  { %v2098_v32 = vpop.f32.mrf.mxu1  ;;  %v2122_v33 = vpop.f32.mrf.mxu0 }
 0x21b   :  { %v991_v35 = vsel %vm848_vm2, %v1961_v31, 0  ;;  %v1349_v15 = vsel %vm1301_vm3, %v1967_v9, 0 }
 0x21c   :  { %v562_v36 = vpop.f32.mrf.mxu1  ;;  %v759_v37 = vpop.f32.mrf.mxu0  ;;  %2166 = vmatpush3.bf16.xpose.msra.mxu1 %v991_v35 }
 0x21d   :  { %v1970_v39 = vpack.c.bf16 %v759_v37, %v759_v37  ;;  %2177 = vmatprep.subr.bf16.mxu1 %v2349_v16  ;;  %v1964_v52 = vpack.c.bf16 %v562_v36, %v562_v36 }
 0x21e   :  { %v2113_v40 = vpop.f32.mrf.mxu1  ;;  %v2137_v41 = vpop.f32.mrf.mxu0 }
 0x21f   :  { %v2600_v44 = vsel %vm1301_vm3, %v1970_v39, 0  ;;  %2162 = vmatmul.mubr.msk.bf16.vlgmr.msra.gmra.mxu0 %vm848_vm2, %v1952_v38  ;;  %v1129_v59 = vsel %vm848_vm2, %v1964_v52, 0 }
 0x220   :  { %v565_v45 = vpop.f32.mrf.mxu1  ;;  %v762_v46 = vpop.f32.mrf.mxu0  ;;  %2172 = vmatpush3.bf16.xpose.msra.mxu0 %v1037_v42  ;;  %2173 = vmatprep.mubr.msk.bf16.mxu0 %vm2350_vm1, %v2349_v16 }
 0x221   :  { %v1971_v48 = vpack.c.bf16 %v762_v46, %v762_v46  ;;  %2183 = vmatprep.subr.bf16.mxu0 %v2349_v16  ;;  %v1965_v60 = vpack.c.bf16 %v565_v45, %v565_v45 }
 0x222   :  { %v2114_v49 = vpop.f32.mrf.mxu1  ;;  %v2138_v50 = vpop.f32.mrf.mxu0 }
 0x223   :  { %v2610_v53 = vsel %vm1301_vm3, %v1971_v48, 0  ;;  %2168 = vmatmul.mubr.msk.bf16.vlgmr.msra.gmra.mxu1 %vm848_vm2, %v1953_v47  ;;  %v1175_v3 = vsel %vm848_vm2, %v1965_v60, 0 }
 0x224   :  { %v701_v54 = vpop.f32.mrf.mxu1  ;;  %2178 = vmatpush3.bf16.xpose.msra.mxu1 %v1083_v51  ;;  %2179 = vmatprep.mubr.msk.bf16.mxu1 %vm2350_vm1, %v2349_v16 }
 0x225   :  { %v1968_v56 = vpack.c.bf16 %v701_v54, %v701_v54  ;;  %2189 = vmatprep.subr.bf16.mxu1 %v2349_v16 }
 0x226   :  { %v2129_v58 = vpop.f32.mrf.mxu1 }
 0x227   :  { %v2620_v62 = vsel %vm1301_vm3, %v1968_v56, 0  ;;  %2174 = vmatmul.mubr.msk.bf16.vlgmr.msra.gmra.mxu0 %vm848_vm2, %v1954_v55 }
 0x228   :  { %v704_v63 = vpop.f32.mrf.mxu1  ;;  %2184 = vmatpush3.bf16.xpose.msra.mxu0 %v1129_v59  ;;  %2185 = vmatprep.mubr.msk.bf16.mxu0 %vm2350_vm1, %v2349_v16 }
 0x229   :  { %v1969_v0 = vpack.c.bf16 %v704_v63, %v704_v63  ;;  %2195 = vmatprep.subr.bf16.mxu0 %v2349_v16 }
 0x22a   :  { %v2130_v1 = vpop.f32.mrf.mxu1 }
 0x22b   :  { %v2632_v4 = vsel %vm1301_vm3, %v1969_v0, 0  ;;  %2180 = vmatmul.mubr.msk.bf16.vlgmr.msra.gmra.mxu1 %vm848_vm2, %v1955_v57 }
 0x22c   :  { %v817_v5 = vpop.f32.mrf.mxu1  ;;  %2190 = vmatpush3.bf16.xpose.msra.mxu1 %v1175_v3  ;;  %2191 = vmatprep.mubr.msk.bf16.mxu1 %vm2350_vm1, %v2349_v16 }
 0x22d   :  { %v1972_v6 = vpack.c.bf16 %v817_v5, %v817_v5  ;;  %2201 = vmatprep.subr.bf16.mxu1 %v2349_v16 }
 0x22e   :  { %v2145_v7 = vpop.f32.mrf.mxu1 }
 0x22f   :  { %v2644_v10 = vsel %vm1301_vm3, %v1972_v6, 0  ;;  %2186 = vmatmul.mubr.msk.bf16.vlgmr.msra.gmra.mxu0 %vm848_vm2, %v1956_v61 }
 0x230   :  { %v820_v11 = vpop.f32.mrf.mxu1  ;;  %2196 = vmatpush3.bf16.msra.mxu0 %v1303_v8  ;;  %2197 = vmatprep.mubr.msk.bf16.mxu0 %vm2350_vm1, %v2349_v16 }
 0x231   :  { %v1973_v13 = vpack.c.bf16 %v820_v11, %v820_v11  ;;  %2207 = vmatprep.subr.bf16.mxu0 %v2349_v16 }
 0x232   :  { %v2146_v14 = vpop.f32.mrf.mxu1 }
 0x233   :  { %v2654_v17 = vsel %vm1301_vm3, %v1973_v13, 0  ;;  %2192 = vmatmul.mubr.msk.bf16.vlgmr.msra.gmra.mxu1 %vm848_vm2, %v1957_v12 }
 0x234   :  { %2202 = vmatpush3.bf16.msra.mxu1 %v1349_v15  ;;  %2203 = vmatprep.mubr.msk.bf16.mxu1 %vm2350_vm1, %v2349_v16 }
 0x235   :  { %2213 = vmatprep.subr.bf16.mxu1 %v2349_v16 }
 0x2cf   :  { %v889_v19 = vpop.f32.mrf.mxu0 }
 0x2d0   :  { %v1218_v18 = vsel %vm1217_vm4, %v889_v19, -inf }
 0x2d1   :  { %1219 = vmax.xlane.f32.xlu0 %v1218_v18  ;;  %v2151_v20 = vpop.f32.mrf.mxu0 }
 0x2d3   :  { %v892_v21 = vpop.f32.mrf.mxu0  ;;  %v935_v22 = vpop.f32.mrf.mxu1 }
 0x2d4   :  { %v1221_v23 = vsel %vm1217_vm4, %v935_v22, -inf }
 0x2d5   :  { %v2152_v24 = vpop.f32.mrf.mxu0  ;;  %1222 = vmax.xlane.f32.xlu1 %v1221_v23  ;;  %v2157_v25 = vpop.f32.mrf.mxu1 }
 0x2d7   :  { %v938_v26 = vpop.f32.mrf.mxu1 }
 0x2d9   :  { %v2158_v27 = vpop.f32.mrf.mxu1 }
 0x2df   :  { %v981_v28 = vpop.f32.mrf.mxu0 }
 0x2e0   :  { %v1224_v29 = vsel %vm1217_vm4, %v981_v28, -inf }
 0x2e1   :  { %1225 = vmax.xlane.f32.xlu0 %v1224_v29  ;;  %v2163_v30 = vpop.f32.mrf.mxu0 }
 0x2e3   :  { %v984_v31 = vpop.f32.mrf.mxu0  ;;  %v1027_v32 = vpop.f32.mrf.mxu1 }
 0x2e4   :  { %v1227_v33 = vsel %vm1217_vm4, %v1027_v32, -inf }
 0x2e5   :  { %v2164_v34 = vpop.f32.mrf.mxu0  ;;  %1228 = vmax.xlane.f32.xlu1 %v1227_v33  ;;  %v2169_v35 = vpop.f32.mrf.mxu1 }
 0x2e7   :  { %v1030_v36 = vpop.f32.mrf.mxu1  ;;  %v1073_v37 = vpop.f32.mrf.mxu0 }
 0x2e8   :  { %v1230_v38 = vsel %vm1217_vm4, %v1073_v37, -inf }
 0x2e9   :  { %1231 = vmax.xlane.f32.xlu0 %v1230_v38  ;;  %v2170_v39 = vpop.f32.mrf.mxu1  ;;  %v2175_v40 = vpop.f32.mrf.mxu0 }
 0x2eb   :  { %v1076_v41 = vpop.f32.mrf.mxu0  ;;  %v1119_v42 = vpop.f32.mrf.mxu1 }
 0x2ec   :  { %v1233_v43 = vsel %vm1217_vm4, %v1119_v42, -inf }
 0x2ed   :  { %v2176_v45 = vpop.f32.mrf.mxu0  ;;  %1234 = vmax.xlane.f32.xlu1 %v1233_v43  ;;  %v2181_v46 = vpop.f32.mrf.mxu1 }
 0x2ef   :  { %v1122_v47 = vpop.f32.mrf.mxu1  ;;  %v1165_v48 = vpop.f32.mrf.mxu0 }
 0x2f0   :  { %v1236_v49 = vsel %vm1217_vm4, %v1165_v48, -inf }
 0x2f1   :  { %1237 = vmax.xlane.f32.xlu0 %v1236_v49  ;;  %v2182_v50 = vpop.f32.mrf.mxu1  ;;  %v2187_v51 = vpop.f32.mrf.mxu0 }
 0x2f3   :  { %v1168_v52 = vpop.f32.mrf.mxu0  ;;  %v1211_v54 = vpop.f32.mrf.mxu1 }
 0x2f4   :  { %v1239_v55 = vsel %vm1217_vm4, %v1211_v54, -inf }
 0x2f5   :  { %v2188_v56 = vpop.f32.mrf.mxu0  ;;  %1240 = vmax.xlane.f32.xlu1 %v1239_v55  ;;  %v2193_v58 = vpop.f32.mrf.mxu1 }
 0x2f7   :  { %v1214_v59 = vpop.f32.mrf.mxu1 }
 0x2f9   :  { %v2194_v60 = vpop.f32.mrf.mxu1 }
 0x35a   :  { %v1220_v63 = vpop.xlane.xlu0 %1219 }
 0x35b   :  { %v1242_v57 = vsub.f32 %v889_v19, %v1220_v63 }
 0x35d   :  { %v1250_v0 = vmul.f32 1.442695, %v1242_v57 }
 0x35e   :  { %v1223_v1 = vpop.xlane.xlu1 %1222 }
 0x35f   :  { %2295 = vpow2.f32 %v1250_v0  ;;  %v1243_v2 = vsub.f32 %v935_v22, %v1223_v1 }
 0x361   :  { %v1252_v3 = vmul.f32 1.442695, %v1243_v2 }
 0x363   :  { %2297 = vpow2.f32 %v1252_v3 }
 0x36a   :  { %v1226_v5 = vpop.xlane.xlu0 %1225 }
 0x36b   :  { %v1244_v61 = vsub.f32 %v981_v28, %v1226_v5  ;;  %v2287_v5 = vld [vmem:[%s2759_s6 + $0x18] sm:$0xff]  }
 0x36c   :  { %v2668_v6 = vpop.eup %2295 }
 0x36d   :  { %v1254_v7 = vmul.f32 1.442695, %v1244_v61  ;;  %v1290_v8 = vpack.c.bf16 %v2668_v6, %v2668_v6  ;;  %v1266_v40 = vsel %vm1217_vm4, %v2668_v6, 0.0  ;;  %v2288_v61 = vld [vmem:[%s2759_s6 + $0x10] sm:$0xff]  }
 0x36e   :  { %v1229_v9 = vpop.xlane.xlu1 %1228 }
 0x36f   :  { %2299 = vpow2.f32 %v1254_v7  ;;  %v1245_v11 = vsub.f32 %v1027_v32, %v1229_v9  ;;  %2198 = vmatmul.mubr.msk.bf16.vlgmr.msra.gmra.mxu0 %vm1217_vm4, %v1290_v8 }
 0x370   :  { %v2673_v12 = vpop.eup %2297  ;;  %2208 = vmatpush3.bf16.msra.mxu0 %v2620_v62  ;;  %2209 = vmatprep.mubr.msk.bf16.mxu0 %vm2350_vm1, %v2349_v16 }
 0x371   :  { %v1256_v13 = vmul.f32 1.442695, %v1245_v11  ;;  %v1291_v14 = vpack.c.bf16 %v2673_v12, %v2673_v12  ;;  %2219 = vmatprep.subr.bf16.mxu0 %v2349_v16 }
 0x372   :  { %v1232_v15 = vpop.xlane.xlu0 %1231 }
 0x373   :  { %2301 = vpow2.f32 %v1256_v13  ;;  %v1246_v19 = vsub.f32 %v1073_v37, %v1232_v15  ;;  %2204 = vmatmul.mubr.msk.bf16.vlgmr.msra.gmra.mxu1 %vm1217_vm4, %v1291_v14  ;;  %v2289_v13 = vld [vmem:[%s2759_s6 + $0x8] sm:$0xff]  }
 0x374   :  { %2214 = vmatpush3.bf16.msra.mxu1 %v2632_v4  ;;  %2215 = vmatprep.mubr.msk.bf16.mxu1 %vm2350_vm1, %v2349_v16 }
 0x375   :  { %v1258_v62 = vmul.f32 1.442695, %v1246_v19  ;;  %2225 = vmatprep.subr.bf16.mxu1 %v2349_v16 }
 0x376   :  { %v1235_v18 = vpop.xlane.xlu1 %1234 }
 0x377   :  { %2303 = vpow2.f32 %v1258_v62  ;;  %v1247_v20 = vsub.f32 %v1119_v42, %v1235_v18  ;;  %v2290_v18 = vld [vmem:[%s2759_s6] sm:$0xff]   ;;  %s2352_s6 = smov 32  }
 0x379   :  { %v1260_v21 = vmul.f32 1.442695, %v1247_v20 }
 0x37a   :  { %v1238_v22 = vpop.xlane.xlu0 %1237 }
 0x37b   :  { %2305 = vpow2.f32 %v1260_v21  ;;  %v1248_v23 = vsub.f32 %v1165_v48, %v1238_v22 }
 0x37c   :  { %v2300_v24 = vpop.eup %2299 }
 0x37d   :  { %v1262_v25 = vmul.f32 1.442695, %v1248_v23  ;;  %v1272_v26 = vsel %vm1217_vm4, %v2300_v24, 0.0  ;;  %v1292_v27 = vpack.c.bf16 %v2300_v24, %v2300_v24 }
 0x37e   :  { %1273 = vadd.xlane.f32.xlu0 %v1272_v26  ;;  %v1241_v4 = vpop.xlane.xlu1 %1240 }
 0x37f   :  { %2307 = vpow2.f32 %v1262_v25  ;;  %v1249_v28 = vsub.f32 %v1211_v54, %v1241_v4  ;;  %2210 = vmatmul.mubr.msk.bf16.vlgmr.msra.gmra.mxu0 %vm1217_vm4, %v1292_v27 }
 0x380   :  { %v2302_v29 = vpop.eup %2301  ;;  %2220 = vmatpush3.bf16.msra.mxu0 %v2600_v44  ;;  %2221 = vmatprep.mubr.msk.bf16.mxu0 %vm2350_vm1, %v2349_v16 }
 0x381   :  { %v1264_v30 = vmul.f32 1.442695, %v1249_v28  ;;  %v1275_v31 = vsel %vm1217_vm4, %v2302_v29, 0.0  ;;  %v1293_v32 = vpack.c.bf16 %v2302_v29, %v2302_v29  ;;  %2231 = vmatprep.subr.bf16.mxu0 %v2349_v16 }
 0x382   :  { %1276 = vadd.xlane.f32.xlu1 %v1275_v31 }
 0x383   :  { %2309 = vpow2.f32 %v1264_v30  ;;  %2216 = vmatmul.mubr.msk.bf16.vlgmr.msra.gmra.mxu1 %vm1217_vm4, %v1293_v32 }
 0x384   :  { %v2304_v33 = vpop.eup %2303  ;;  %2226 = vmatpush3.bf16.msra.mxu1 %v2610_v53  ;;  %2227 = vmatprep.mubr.msk.bf16.mxu1 %vm2350_vm1, %v2349_v16 }
 0x385   :  { %v1278_v44 = vsel %vm1217_vm4, %v2304_v33, 0.0  ;;  %v1294_v34 = vpack.c.bf16 %v2304_v33, %v2304_v33  ;;  %2237 = vmatprep.subr.bf16.mxu1 %v2349_v16 }
 0x386   :  { %1279 = vadd.xlane.f32.xlu0 %v1278_v44 }
 0x387   :  { %2222 = vmatmul.mubr.msk.bf16.vlgmr.msra.gmra.mxu0 %vm1217_vm4, %v1294_v34 }
 0x388   :  { %v2306_v35 = vpop.eup %2305  ;;  %2232 = vmatpush3.bf16.msra.mxu0 %v2644_v10  ;;  %2233 = vmatprep.mubr.msk.bf16.mxu0 %vm2350_vm1, %v2349_v16 }
 0x389   :  { %v1281_v36 = vsel %vm1217_vm4, %v2306_v35, 0.0  ;;  %v1295_v53 = vpack.c.bf16 %v2306_v35, %v2306_v35  ;;  %2243 = vmatprep.subr.bf16.mxu0 %v2349_v16 }
 0x38a   :  { %1282 = vadd.xlane.f32.xlu1 %v1281_v36 }
 0x38b   :  { %2228 = vmatmul.mubr.msk.bf16.vlgmr.msra.gmra.mxu1 %vm1217_vm4, %v1295_v53 }
 0x38c   :  { %v2308_v37 = vpop.eup %2307  ;;  %2238 = vmatpush3.bf16.msra.mxu1 %v2654_v17  ;;  %2239 = vmatprep.mubr.msk.bf16.mxu1 %vm2350_vm1, %v2349_v16  ;;  %v1269_v17 = vsel %vm1217_vm4, %v2673_v12, 0.0 }
 0x38d   :  { %v1284_v38 = vsel %vm1217_vm4, %v2308_v37, 0.0  ;;  %v1296_v10 = vpack.c.bf16 %v2308_v37, %v2308_v37 }
 0x38e   :  { %1285 = vadd.xlane.f32.xlu0 %v1284_v38 }
 0x38f   :  { %2234 = vmatmul.mubr.msk.bf16.vlgmr.msra.gmra.mxu0 %vm1217_vm4, %v1296_v10 }
 0x390   :  { %v2310_v39 = vpop.eup %2309  ;;  %2251 = vmatprep.mubr.msk.bf16.mxu0 %vm2350_vm1, %v2349_v16  ;;  %2244 = vmatpush3.bf16.msra.mxu0 %v2287_v5 }
 0x391   :  { %v1287_v41 = vsel %vm1217_vm4, %v2310_v39, 0.0  ;;  %v1297_v42 = vpack.c.bf16 %v2310_v39, %v2310_v39  ;;  %2245 = vmatprep.subr.bf16.mxu0 %v2349_v16 }
 0x392   :  { %1267 = vadd.xlane.f32.xlu0 %v1266_v40  ;;  %1288 = vadd.xlane.f32.xlu1 %v1287_v41 }
 0x393   :  { %2240 = vmatmul.mubr.msk.bf16.vlgmr.msra.gmra.mxu1 %vm1217_vm4, %v1297_v42 }
 0x394   :  { %2246 = vmatpush3.bf16.msra.mxu0 %v2288_v61 }
 0x395   :  { %2247 = vmatprep.subr.bf16.mxu0 %v2349_v16 }
 0x396   :  { %1270 = vadd.xlane.f32.xlu1 %v1269_v17 }
 0x398   :  { %2248 = vmatpush3.bf16.msra.mxu0 %v2289_v13 }
 0x399   :  { %2249 = vmatprep.subr.bf16.mxu0 %v2349_v16 }
 0x39c   :  { %2250 = vmatpush3.bf16.msra.mxu0 %v2290_v18 }
 0x407   :  { %v1274_v43 = vpop.xlane.xlu0 %1273 }
 0x40b   :  { %v1277_v45 = vpop.xlane.xlu1 %1276 }
 0x40f   :  { %v1280_v46 = vpop.xlane.xlu0 %1279 }
 0x413   :  { %v1283_v47 = vpop.xlane.xlu1 %1282 }
 0x417   :  { %v1286_v48 = vpop.xlane.xlu0 %1285 }
 0x41b   :  { %v1289_v49 = vpop.xlane.xlu1 %1288  ;;  %v1268_v50 = vpop.xlane.xlu0 %1267 }
 0x41c   :  { %2311 = vrcp.f32 %v1268_v50  ;;  %v1944_v50 = vld [vmem:[%s2760_s7] ss:$0 sm:$0xff] }
 0x41f   :  { %v1271_v51 = vpop.xlane.xlu1 %1270 }
 0x420   :  { %2313 = vrcp.f32 %v1271_v51 }
 0x421   :  { %2315 = vrcp.f32 %v1274_v43 }
 0x422   :  { %2317 = vrcp.f32 %v1277_v45 }
 0x423   :  { %2319 = vrcp.f32 %v1280_v46 }
 0x424   :  { %2321 = vrcp.f32 %v1283_v47 }
 0x425   :  { %2323 = vrcp.f32 %v1286_v48 }
 0x426   :  { %2325 = vrcp.f32 %v1289_v49 }
 0x429   :  { %v2312_v55 = vpop.eup %2311 }
 0x42d   :  { %v2314_v56 = vpop.eup %2313 }
 0x42e   :  { %v2316_v8 = vpop.eup %2315 }
 0x42f   :  { %v1339_v52 = vpop.f32.mrf.mxu0  ;;  %v2318_v9 = vpop.eup %2317 }
 0x430   :  { %v2719_v60 = vmul.f32 %v2312_v55, %v1339_v52  ;;  %v2320_v25 = vpop.eup %2319 }
 0x431   :  { %v2199_v54 = vpop.f32.mrf.mxu0  ;;  %v2322_v26 = vpop.eup %2321 }
 0x432   :  { %v2324_v35 = vpop.eup %2323 }
 0x433   :  { %v1342_v58 = vpop.f32.mrf.mxu0  ;;  %v1385_v59 = vpop.f32.mrf.mxu1 }
 0x434   :  { %v2721_v63 = vmul.f32 %v2314_v56, %v1385_v59  ;;  %v2326_v36 = vpop.eup %2325 }
 0x435   :  { %v2200_v57 = vpop.f32.mrf.mxu0  ;;  %v2205_v0 = vpop.f32.mrf.mxu1 }
 0x436   :  { %v1974_v1 = vpack.c.bf16 %v2721_v63, %v2719_v60 }
 0x437   :  { %v1388_v2 = vpop.f32.mrf.mxu1 }
 0x439   :  { %v2206_v3 = vpop.f32.mrf.mxu1 }
 0x43f   :  { %v1431_v6 = vpop.f32.mrf.mxu0 }
 0x440   :  { %v1672_v14 = vmul.f32 %v2316_v8, %v1431_v6 }
 0x441   :  { %v2211_v7 = vpop.f32.mrf.mxu0 }
 0x443   :  { %v1434_v11 = vpop.f32.mrf.mxu0  ;;  %v1477_v12 = vpop.f32.mrf.mxu1 }
 0x444   :  { %v1674_v15 = vmul.f32 %v2318_v9, %v1477_v12 }
 0x445   :  { %v2212_v19 = vpop.f32.mrf.mxu0  ;;  %v2217_v62 = vpop.f32.mrf.mxu1 }
 0x446   :  { %v1975_v20 = vpack.c.bf16 %v1674_v15, %v1672_v14 }
 0x447   :  { %v1480_v21 = vpop.f32.mrf.mxu1  ;;  %v1523_v22 = vpop.f32.mrf.mxu0 }
 0x448   :  { %1701 = vrot.lane.b32.xlu0 %v1975_v20, %s2351_s14  ;;  %v1676_v28 = vmul.f32 %v2320_v25, %v1523_v22 }
 0x449   :  { %v2218_v23 = vpop.f32.mrf.mxu1  ;;  %v2223_v24 = vpop.f32.mrf.mxu0 }
 0x44b   :  { %v1526_v27 = vpop.f32.mrf.mxu0  ;;  %v1569_v4 = vpop.f32.mrf.mxu1 }
 0x44c   :  { %v1678_v29 = vmul.f32 %v2322_v26, %v1569_v4 }
 0x44d   :  { %v2224_v30 = vpop.f32.mrf.mxu0  ;;  %v2229_v31 = vpop.f32.mrf.mxu1 }
 0x44e   :  { %v1976_v32 = vpack.c.bf16 %v1678_v29, %v1676_v28 }
 0x44f   :  { %v1572_v33 = vpop.f32.mrf.mxu1  ;;  %v1615_v44 = vpop.f32.mrf.mxu0 }
 0x450   :  { %1708 = vrot.lane.b32.xlu1 %v1976_v32, %s2352_s6  ;;  %v1680_v38 = vmul.f32 %v2324_v35, %v1615_v44 }
 0x451   :  { %v2230_v16 = vpop.f32.mrf.mxu1  ;;  %v2235_v34 = vpop.f32.mrf.mxu0 }
 0x453   :  { %v1618_v53 = vpop.f32.mrf.mxu0  ;;  %v1661_v37 = vpop.f32.mrf.mxu1 }
 0x454   :  { %v1682_v10 = vmul.f32 %v2326_v36, %v1661_v37 }
 0x455   :  { %v2236_v39 = vpop.f32.mrf.mxu0  ;;  %v2241_v40 = vpop.f32.mrf.mxu1 }
 0x456   :  { %v1977_v41 = vpack.c.bf16 %v1682_v10, %v1680_v38 }
 0x457   :  { %v1664_v42 = vpop.f32.mrf.mxu1 }
 0x458   :  { %1715 = vrot.lane.b32.xlu1 %v1977_v41, %s2353_s15 }
 0x459   :  { %v2242_v17 = vpop.f32.mrf.mxu1 }
 0x4ba   :  { %v1702_v43 = vpop.permute.xlu0 %1701 }
 0x4bb   :  { %v1719_v46 = vsel %vm848_vm2, %v1974_v1, %v1702_v43 }
 0x4c2   :  { %v1709_v45 = vpop.permute.xlu1 %1708 }
 0x4c3   :  { %v1721_v47 = vsel %vm33_vm0, %v1719_v46, %v1709_v45 }
 0x4ca   :  { %v1716_v48 = vpop.permute.xlu1 %1715 }
 0x4cb   :  { %v1724_v49 = vsel %vm1722_vm5, %v1721_v47, %v1716_v48 }
 0x4cc   :  { %2252 = vmatmul.mubr.msk.bf16.vlgmr.msra.gmra.mxu0 %vm1764_vm6, %v1724_v49 }
 0x58c   :  { %v1801_v51 = vpop.f32.mrf.mxu0 }
 0x58d   :  { %v1802_v52 = vadd.f32 %v1944_v50, %v1801_v51 }
 0x58e   :  { %v2253_v54 = vpop.f32.mrf.mxu0 }
 0x58f   :  { %1808 = vst.msk [vmem:[#allocation2] sm:$0xff] %vm33_vm0, %v1802_v52 }
 0x590   :  { %v1804_v55 = vpop.f32.mrf.mxu0 }
 0x591   :  { %v1805_v56 = vadd.f32 %v1944_v50, %v1804_v55 }
 0x592   :  { %v2254_v58 = vpop.f32.mrf.mxu0 }
 0x593   :  { %1809 = vst.msk [vmem:[#allocation2 + $0x8] sm:$0xff] %vm33_vm0, %v1805_v56 }
 0x594   :  { %2338 = shalt.err (!%p2335_p4)
}
 0x595   :  { %s2355_s7 = smov 128   ;;  %s2356_s21 = smov 8  }
 0x596   :  { %1821 = dma.vmem_to_hbm [thread:$0]  %s1816_s19, 256, %s2761_s8, [#allocation3], %s2355_s7, %s2355_s7, %s2356_s21  }
 0x597   :  { %2347 = dma.done.wait [#allocation3], 256  }
 0x598   :  { %2348 = vsyncadd [#allocation3], 4294967040 }
 0x599   :  { %1825 = vsyncpa [#allocation3], 1 }

</bundles_post_ra>
